<compile_context>
chip_gen: v6e
topology: v6e:2x2x1
jax: 0.10.0
libtpu: 0.0.40
codegen_flags: <defaults>
</compile_context>

<pallas_src>
import jax
import jax.numpy as jnp
from jax.experimental import pallas as pl
from jax.experimental.pallas import tpu as pltpu


def _leaky_relu(x, slope=0.2):
    return jnp.where(x > 0, x, slope * x)


def discriminator_kernel(z_ref, w1_ref, b1_ref, w2_ref, b2_ref, w3_ref, b3_ref,
                         out_ref):
    # Layer 1: Linear(latent_dim, 512) + LeakyReLU(0.2)
    # bf16 MXU operands, f32 accumulate; epilogue in f32.
    h1 = jnp.dot(z_ref[...], w1_ref[...], preferred_element_type=jnp.float32)
    h1 = _leaky_relu(h1 + b1_ref[...])

    # Layer 2: Linear(512, 256) + LeakyReLU(0.2)
    h2 = jnp.dot(h1.astype(jnp.bfloat16), w2_ref[...],
                 preferred_element_type=jnp.float32)
    h2 = _leaky_relu(h2 + b2_ref[...])

    # Layer 3: Linear(256, 1) + Sigmoid, done on the VPU/XLU (mul + lane
    # reduction) instead of a pathologically narrow N=1 MXU matmul.
    logit = jnp.sum(h2 * w3_ref[...], axis=-1, keepdims=True) + b3_ref[...]
    out_ref[...] = jax.nn.sigmoid(logit).astype(out_ref.dtype)


def _pick_batch_tile(B):
    # Prefer 512-1024 rows per step (a few MB of per-step activations, ~85% of
    # roofline per the tiling measurements) and >=2 grid steps so there is
    # something to pipeline / shard across megacores. Fall back to B for tiny
    # batches (full-extent blocks are exempt from the (8,128) rule).
    for cand in (1024, 512, 256, 128, 64, 32, 16, 8):
        if B % cand == 0 and B // cand >= 2:
            return cand
    return B


def discriminator_forward(z, params, *, batch_tile=None):
    B, latent_dim = z.shape
    w1, b1, w2, b2, w3, b3 = params

    if batch_tile is None:
        batch_tile = _pick_batch_tile(B)
    assert B % batch_tile == 0, "batch must be divisible by batch_tile"
    assert batch_tile % 8 == 0 or batch_tile == B, (
        "batch_tile must be a multiple of 8 (sublane rule) unless it equals B")

    # bf16 MXU operands; layer-3 weights stay f32 (they run on the VPU).
    # TODO(synk): if latent_dim grows, pad it to a multiple of 128 at
    # parameter-init time for lane-dense z loads / full-width MXU layer 1.
    z_bf = z.astype(jnp.bfloat16)
    w1_bf = w1.astype(jnp.bfloat16)
    w2_bf = w2.astype(jnp.bfloat16)
    w3_row = w3.reshape(1, -1).astype(jnp.float32)     # (1, 256)
    b1_f = b1.astype(jnp.float32)                      # (1, 512)
    b2_f = b2.astype(jnp.float32)                      # (1, 256)
    b3_f = b3.reshape(1, 1).astype(jnp.float32)        # (1, 1)

    grid = (B // batch_tile,)

    in_specs = [
        pl.BlockSpec((batch_tile, latent_dim), lambda i: (i, 0)),  # z
        pl.BlockSpec(w1_bf.shape, lambda i: (0, 0)),               # w1
        pl.BlockSpec(b1_f.shape, lambda i: (0, 0)),                # b1
        pl.BlockSpec(w2_bf.shape, lambda i: (0, 0)),               # w2
        pl.BlockSpec(b2_f.shape, lambda i: (0, 0)),                # b2
        pl.BlockSpec(w3_row.shape, lambda i: (0, 0)),              # w3 (row)
        pl.BlockSpec(b3_f.shape, lambda i: (0, 0)),                # b3
    ]
    out_specs = pl.BlockSpec((batch_tile, 1), lambda i: (i, 0))

    flops = 2 * B * (latent_dim * 512 + 512 * 256 + 256)
    bytes_accessed = (
        int(z_bf.size) * 2 + int(w1_bf.size) * 2 + int(w2_bf.size) * 2
        + int(w3_row.size) * 4
        + (int(b1_f.size) + int(b2_f.size) + int(b3_f.size)) * 4
        + B * 4  # output
    )
    cost = pl.CostEstimate(flops=int(flops), transcendentals=int(B),
                           bytes_accessed=int(bytes_accessed))

    return pl.pallas_call(
        discriminator_kernel,
        out_shape=jax.ShapeDtypeStruct((B, 1), jnp.float32),
        grid_spec=pltpu.PrefetchScalarGridSpec(
            num_scalar_prefetch=0,
            grid=grid,
            in_specs=in_specs,
            out_specs=out_specs,
        ),
        compiler_params=pltpu.CompilerParams(
            dimension_semantics=("parallel",)),
        cost_estimate=cost,
    )(z_bf, w1_bf, b1_f, w2_bf, b2_f, w3_row, b3_f)


def init_params(key, latent_dim):
    """Deterministic init mimicking PyTorch Linear U(-1/sqrt(in), 1/sqrt(in))."""
    dims = [(latent_dim, 512), (512, 256), (256, 1)]
    params = []
    for (fan_in, fan_out) in dims:
        key, kw, kb = jax.random.split(key, 3)
        bound = 1.0 / jnp.sqrt(jnp.float32(fan_in))
        w = jax.random.uniform(kw, (fan_in, fan_out), jnp.float32, -bound, bound)
        b = jax.random.uniform(kb, (1, fan_out), jnp.float32, -bound, bound)
        params.extend([w, b])
    return tuple(params)


def reference_forward(z, params):
    w1, b1, w2, b2, w3, b3 = params
    h1 = _leaky_relu(z @ w1 + b1)
    h2 = _leaky_relu(h1 @ w2 + b2)
    return jax.nn.sigmoid(h2 @ w3 + b3)


if __name__ == "__main__":
    key = jax.random.PRNGKey(0)
    latent_dim = 32
    batch = 16  # small, but gives 2 grid steps (batch_tile=8) to exercise tiling

    kz, kp = jax.random.split(key)
    z = jax.random.normal(kz, (batch, latent_dim), jnp.float32)
    params = init_params(kp, latent_dim)

    out = jax.block_until_ready(discriminator_forward(z, params))

    ref = reference_forward(z, params)
    assert out.shape == (batch, 1)
    # bf16 MXU operands vs. a pure-f32 reference -> loosened tolerance.
    assert jnp.allclose(out, ref, atol=3e-2, rtol=0.0), "mismatch vs reference"

    print("KERNEL_OK")
</pallas_src>

<mosaic_0001>
module attributes {stable_mosaic.version = 11 : i64} {
  func.func @discriminator_kernel(%arg0: i32, %arg1: memref<8x32xbf16, #tpu.memory_space<vmem>>, %arg2: memref<32x512xbf16, #tpu.memory_space<vmem>>, %arg3: memref<1x512xf32, #tpu.memory_space<vmem>>, %arg4: memref<512x256xbf16, #tpu.memory_space<vmem>>, %arg5: memref<1x256xf32, #tpu.memory_space<vmem>>, %arg6: memref<1x256xf32, #tpu.memory_space<vmem>>, %arg7: memref<1x1xf32, #tpu.memory_space<vmem>>, %arg8: memref<8x1xf32, #tpu.memory_space<vmem>>) attributes {dimension_semantics = [#tpu.dimension_semantics<parallel>], iteration_bounds = array<i64: 2>, scalar_prefetch = 0 : i64, scratch_operands = 0 : i64, tpu.core_type = #tpu.core_type<tc>, window_params = [{transform_indices = @transform_0, window_bounds = array<i64: 8, 32>}, {pipeline_mode = #tpu.pipeline_mode<synchronous>, transform_indices = @transform_1, window_bounds = array<i64: 32, 512>}, {pipeline_mode = #tpu.pipeline_mode<synchronous>, transform_indices = @transform_2, window_bounds = array<i64: 1, 512>}, {pipeline_mode = #tpu.pipeline_mode<synchronous>, transform_indices = @transform_3, window_bounds = array<i64: 512, 256>}, {pipeline_mode = #tpu.pipeline_mode<synchronous>, transform_indices = @transform_4, window_bounds = array<i64: 1, 256>}, {pipeline_mode = #tpu.pipeline_mode<synchronous>, transform_indices = @transform_5, window_bounds = array<i64: 1, 256>}, {pipeline_mode = #tpu.pipeline_mode<synchronous>, transform_indices = @transform_6, window_bounds = array<i64: 1, 1>}, {transform_indices = @transform_7, window_bounds = array<i64: 8, 1>}]} {
    %c0 = arith.constant 0 : index
    %c0_0 = arith.constant 0 : index
    %0 = vector.load %arg1[%c0, %c0_0] : memref<8x32xbf16, #tpu.memory_space<vmem>>, vector<8x32xbf16>
    %c0_1 = arith.constant 0 : index
    %c0_2 = arith.constant 0 : index
    %1 = vector.load %arg2[%c0_1, %c0_2] : memref<32x512xbf16, #tpu.memory_space<vmem>>, vector<32x512xbf16>
    %cst = arith.constant dense<0.000000e+00> : vector<8x512xf32>
    %2 = tpu.matmul %0, %1, %cst {dimension_numbers = #tpu.dot_dimension_numbers<[1], [0], [0], [1], [0, 0, 1, 1], [], []>} : vector<8x32xbf16>, vector<32x512xbf16>, vector<8x512xf32> -> vector<8x512xf32>
    %c0_3 = arith.constant 0 : index
    %c0_4 = arith.constant 0 : index
    %3 = vector.load %arg3[%c0_3, %c0_4] : memref<1x512xf32, #tpu.memory_space<vmem>>, vector<1x512xf32>
    %4 = vector.broadcast %3 : vector<1x512xf32> to vector<8x512xf32>
    %5 = arith.addf %2, %4 : vector<8x512xf32>
    %cst_5 = arith.constant 0.000000e+00 : f32
    %6 = vector.broadcast %cst_5 : f32 to vector<8x512xf32>
    %7 = arith.cmpf ogt, %5, %6 : vector<8x512xf32>
    %cst_6 = arith.constant 2.000000e-01 : f32
    %8 = vector.broadcast %cst_6 : f32 to vector<8x512xf32>
    %9 = arith.mulf %8, %5 : vector<8x512xf32>
    %10 = arith.select %7, %5, %9 : vector<8x512xi1>, vector<8x512xf32>
    %11 = arith.truncf %10 : vector<8x512xf32> to vector<8x512xbf16>
    %c0_7 = arith.constant 0 : index
    %c0_8 = arith.constant 0 : index
    %12 = vector.load %arg4[%c0_7, %c0_8] : memref<512x256xbf16, #tpu.memory_space<vmem>>, vector<512x256xbf16>
    %cst_9 = arith.constant dense<0.000000e+00> : vector<8x256xf32>
    %13 = tpu.matmul %11, %12, %cst_9 {dimension_numbers = #tpu.dot_dimension_numbers<[1], [0], [0], [1], [0, 0, 1, 1], [], []>} : vector<8x512xbf16>, vector<512x256xbf16>, vector<8x256xf32> -> vector<8x256xf32>
    %c0_10 = arith.constant 0 : index
    %c0_11 = arith.constant 0 : index
    %14 = vector.load %arg5[%c0_10, %c0_11] : memref<1x256xf32, #tpu.memory_space<vmem>>, vector<1x256xf32>
    %15 = vector.broadcast %14 : vector<1x256xf32> to vector<8x256xf32>
    %16 = arith.addf %13, %15 : vector<8x256xf32>
    %cst_12 = arith.constant 0.000000e+00 : f32
    %17 = vector.broadcast %cst_12 : f32 to vector<8x256xf32>
    %18 = arith.cmpf ogt, %16, %17 : vector<8x256xf32>
    %cst_13 = arith.constant 2.000000e-01 : f32
    %19 = vector.broadcast %cst_13 : f32 to vector<8x256xf32>
    %20 = arith.mulf %19, %16 : vector<8x256xf32>
    %21 = arith.select %18, %16, %20 : vector<8x256xi1>, vector<8x256xf32>
    %c0_14 = arith.constant 0 : index
    %c0_15 = arith.constant 0 : index
    %22 = vector.load %arg6[%c0_14, %c0_15] : memref<1x256xf32, #tpu.memory_space<vmem>>, vector<1x256xf32>
    %23 = vector.broadcast %22 : vector<1x256xf32> to vector<8x256xf32>
    %24 = arith.mulf %21, %23 : vector<8x256xf32>
    %cst_16 = arith.constant dense<0.000000e+00> : vector<8xf32>
    %25 = vector.multi_reduction <add>, %24, %cst_16 [1] : vector<8x256xf32> to vector<8xf32>
    %26 = vector.shape_cast %25 : vector<8xf32> to vector<8x1xf32>
    %c0_17 = arith.constant 0 : index
    %c0_18 = arith.constant 0 : index
    %27 = vector.load %arg7[%c0_17, %c0_18] : memref<1x1xf32, #tpu.memory_space<vmem>>, vector<1x1xf32>
    %28 = vector.broadcast %27 : vector<1x1xf32> to vector<8x1xf32>
    %29 = arith.addf %26, %28 : vector<8x1xf32>
    %30 = arith.negf %29 : vector<8x1xf32>
    %31 = math.exp %30 : vector<8x1xf32>
    %cst_19 = arith.constant 1.000000e+00 : f32
    %32 = vector.broadcast %cst_19 : f32 to vector<8x1xf32>
    %33 = arith.addf %32, %31 : vector<8x1xf32>
    %34 = arith.divf %32, %33 : vector<8x1xf32>
    %c0_20 = arith.constant 0 : index
    %c0_21 = arith.constant 0 : index
    %35 = vector.load %arg8[%c0_20, %c0_21] : memref<8x1xf32, #tpu.memory_space<vmem>>, vector<8x1xf32>
    tpu.vector_store %arg8[%c0_20, %c0_21], %34 {strides = array<i32>} : memref<8x1xf32, #tpu.memory_space<vmem>>, vector<8x1xf32>,
    return
  }
  func.func @transform_0(%arg0: i32) -> (i32, i32) {
    %c0_i32 = arith.constant 0 : i32
    %c0_i32_0 = arith.constant 0 : i32
    return %arg0, %c0_i32 : i32, i32
  }
  func.func @transform_1(%arg0: i32) -> (i32, i32) {
    %c0_i32 = arith.constant 0 : i32
    %c0_i32_0 = arith.constant 0 : i32
    %c0_i32_1 = arith.constant 0 : i32
    return %c0_i32, %c0_i32_0 : i32, i32
  }
  func.func @transform_2(%arg0: i32) -> (i32, i32) {
    %c0_i32 = arith.constant 0 : i32
    %c0_i32_0 = arith.constant 0 : i32
    %c0_i32_1 = arith.constant 0 : i32
    return %c0_i32, %c0_i32_0 : i32, i32
  }
  func.func @transform_3(%arg0: i32) -> (i32, i32) {
    %c0_i32 = arith.constant 0 : i32
    %c0_i32_0 = arith.constant 0 : i32
    %c0_i32_1 = arith.constant 0 : i32
    return %c0_i32, %c0_i32_0 : i32, i32
  }
  func.func @transform_4(%arg0: i32) -> (i32, i32) {
    %c0_i32 = arith.constant 0 : i32
    %c0_i32_0 = arith.constant 0 : i32
    %c0_i32_1 = arith.constant 0 : i32
    return %c0_i32, %c0_i32_0 : i32, i32
  }
  func.func @transform_5(%arg0: i32) -> (i32, i32) {
    %c0_i32 = arith.constant 0 : i32
    %c0_i32_0 = arith.constant 0 : i32
    %c0_i32_1 = arith.constant 0 : i32
    return %c0_i32, %c0_i32_0 : i32, i32
  }
  func.func @transform_6(%arg0: i32) -> (i32, i32) {
    %c0_i32 = arith.constant 0 : i32
    %c0_i32_0 = arith.constant 0 : i32
    %c0_i32_1 = arith.constant 0 : i32
    return %c0_i32, %c0_i32_0 : i32, i32
  }
  func.func @transform_7(%arg0: i32) -> (i32, i32) {
    %c0_i32 = arith.constant 0 : i32
    %c0_i32_0 = arith.constant 0 : i32
    return %arg0, %c0_i32 : i32, i32
  }
}

</mosaic_0001>

<bundles_post_ra>
// kernel: tpu_custom_call.1
= control target key start
LH: loop header
LB: loop body
LE: loop exit
PB: predicated region body
PF: predicated region fallthrough
CT: control target
= control target key end

     0   :  { %s1685_s0 = inlined_call_operand.hbm [shape: bf16[16,32], index: 0, kind: input, shape index: {}]   ;;  %s1686_s1 = inlined_call_operand.hbm [shape: bf16[32,512], index: 1, kind: input, shape index: {}]   ;;  %s1687_s2 = inlined_call_operand.vmem [shape: f32[1,512], index: 2, kind: input, shape index: {}]   ;;  %s1688_s3 = inlined_call_operand.hbm [shape: bf16[512,256], index: 3, kind: input, shape index: {}]   ;;  %s1689_s4 = inlined_call_operand.vmem [shape: f32[1,256], index: 4, kind: input, shape index: {}]   ;;  %s1690_s5 = inlined_call_operand.vmem [shape: f32[1,256], index: 5, kind: input, shape index: {}]   ;;  %s1691_s6 = inlined_call_operand.<no memory space> [shape: f32[1,1], index: 6, kind: input, shape index: {}]   ;;  %s1692_s7 = inlined_call_operand.vmem [shape: f32[16,1], index: 7, kind: output, shape index: {}]  }
   0x1   :  { %v12_v0 = vstv %s1691_s6 }
   0x2   :  { %13 = vst [vmem:[#allocation2] sm:$0x1] %v12_v0 }
   0x3   :  { %14 = vsyncpa [#allocation4], 0 }
   0x4   :  { %16 = vsyncpa [#allocation4 + $0x1], 0 }
   0x5   :  { %17 = vsyncpa [#allocation6], 0  ;;  %s1538_s26 = smov 0   ;;  %s1540_s27 = smov 0  }
   0x6   :  { %s1542_s28 = smov 0   ;;  %s1544_s29 = smov 0  }
   0x7 LB: > { %s1557_s6 = sadd.s32 4294967295, %s1485_s29   ;;  %p43_p0 = scmp.ne.s32.totalorder %s1477_s27, %s1473_s26  ;;  %s1485_s29 = sphi %s1544_s29, %s1707_s29   ;;  %s1481_s28 = sphi %s1542_s28, %s1706_s28   ;;  %s1477_s27 = sphi %s1540_s27, %s1705_s27   ;;  %s1473_s26 = sphi %s1538_s26, %s1704_s26  }
   0x8   : > { %p1693_p1 = scmp.eq.s32.totalorder %s1557_s6, 0  ;;  %p1101_p2 = scmp.ge.s32.totalorder %s1485_s29, 1 }
   0x9   : > { %p206_p3 = scmp.lt.s32.totalorder %s1485_s29, 3  ;;  %s1487_s9 = smov [#allocation5]  }
   0xa   : > { %p1565_p4 = por %p1693_p1, %p43_p0  ;;  %s218_s10 = sshll.u32 %s1487_s9, 4  ;;  %s219_s10 = int_to_ptr.vmem [resolvable:$true] %s218_s10 }
   0xb   : > { %p1569_p5 = pnand %p1101_p2, %p206_p3  ;;  %s1488_s12 = smov [#allocation7]  }
   0xc   : > { %s1696_s30 = scalar_select %p1565_p4, 1, 0 }
   0xd   : > { %s1697_s8 = scalar_select %p1569_p5, 1, 0 }
   0xe   : > { %p1200_p6 = pneg %p1569_p5  ;;  %s234_s13 = sshll.u32 %s1488_s12, 4  ;;  %s235_s13 = int_to_ptr.vmem [resolvable:$true] %s234_s13 }
   0xf   : > { %s1378_s14 = scalar_lea.vmem %s219_s10, 1024  ;;  %p1386_p12 = scmp.lt.s32.totalorder %s219_s10, %s219_s10 }
  0x10   : > { %p1577_p7 = pnand %p1200_p6, %p1693_p1  ;;  %p1379_p9 = scmp.ne.s32.totalorder %s219_s10, %s1378_s14 }
  0x11   : > { %p1387_p13 = scmp.lt.s32.totalorder %s1378_s14, %s1378_s14 }
  0x12   : > { %p1369_p8 = pneg %p1577_p7 }
  0x13   : > { %p1388_p0 = por %p1387_p13, %p1386_p12 }
  0x14   : > { %p1381_p10 = pnand %p1379_p9, %p1369_p8 }
  0x16   : > { %p1382_p11 = pneg %p1381_p10 }
  0x18   : > { %p1389_p2 = pnand %p1388_p0, %p1382_p11 }
  0x1a   : > { %1392 = shalt.err (!%p1389_p2)
}
  0x1b   : > { %s1489_s15 = smov 256   ;;  %s1490_s16 = smov 16  }
  0x1c   : > { %1203 = dma.hbm_to_vmem [thread:$0]  (!%p1577_p7), %s1686_s1, 1024, %s219_s10, [#allocation6], %s1489_s15, %s1489_s15, %s1490_s16  }
  0x1d   : > { %s1404_s19 = scalar_lea.vmem %s235_s13, 8192  ;;  %p1412_p10 = scmp.lt.s32.totalorder %s235_s13, %s235_s13 }
  0x1e   : > { %p1405_p3 = scmp.ne.s32.totalorder %s235_s13, %s1404_s19  ;;  %p1413_p1 = scmp.lt.s32.totalorder %s1404_s19, %s1404_s19 }
  0x20   : > { %p1407_p6 = pnand %p1405_p3, %p1369_p8  ;;  %p1414_p12 = por %p1413_p1, %p1412_p10 }
  0x22   : > { %p1408_p9 = pneg %p1407_p6 }
  0x24   : > { %p1415_p11 = pnand %p1414_p12, %p1408_p9 }
  0x26   : > { %1418 = shalt.err (!%p1415_p11)
}
  0x27   : > { %s1491_s20 = smov 128   ;;  %s1492_s21 = smov 8  }
  0x28   : > { %1206 = dma.hbm_to_vmem [thread:$0]  (!%p1577_p7), %s1688_s3, 8192, %s235_s13, [#allocation6], %s1491_s20, %s1491_s20, %s1492_s21  }
  0x29   : > { %s1600_s24 = sadd.s32 1, %s1485_s29   ;;  %s30_s26 = sadd.s32 1, %s1481_s28 }
  0x2a   : > { %s27_s25 = ssub.s32 %s1485_s29, %s1600_s24  ;;  %p37_p8 = scmp.ne.s32.totalorder %s1481_s28, %s1477_s27 }
  0x2b   : > { %p28_p1 = scmp.eq.s32.totalorder %s27_s25, 0  ;;  %p38_p13 = scmp.eq.s32.totalorder %s1485_s29, 0 }
  0x2c   : > { %p1213_p2 = scmp.lt.s32.totalorder %s1485_s29, 2  ;;  %s257_s10 = sand.u32 1, %s1481_s28  }
  0x2d   : > { %s1609_s9 = scalar_select %p28_p1, %s1481_s28, %s30_s26  }
  0x2e   : > { %p39_p0 = por %p38_p13, %p37_p8  ;;  %s1106_s12 = sshll.u32 %s1485_s29, 6 }
  0x2f   : > { %s1105_s14 = sshll.u32 %s257_s10, 2  ;;  %s1617_s16 = scalar_lea.hbm %s1685_s0, %s1106_s12 }
  0x30   : > { %s261_s13 = scalar_lea.vmem [#allocation3], %s1105_s14  ;;  %p1619_p7 = pnand %p1213_p2, %p39_p0 }
  0x31   : > { %s268_s17 = sshll.u32 %s261_s13, 4  ;;  %s258_s19 = scalar_lea.sflag [#allocation4], %s257_s10  ;;  %s269_s17 = int_to_ptr.vmem [resolvable:$true] %s268_s17 }
  0x32   : > { %s1419_s20 = scalar_lea.hbm %s1617_s16, 64  ;;  %p1421_p6 = pneg %p1619_p7 }
  0x33   : > { %p1420_p3 = scmp.ne.s32.totalorder %s1617_s16, %s1419_s20  ;;  %s1424_s22 = scalar_lea.hbm %s1685_s0, 128 }
  0x34   : > { %p1425_p12 = scmp.lt.s32.totalorder %s1617_s16, %s1685_s0  ;;  %p1426_p11 = scmp.lt.s32.totalorder %s1424_s22, %s1419_s20 }
  0x35   : > { %p1422_p9 = pnand %p1421_p6, %p1420_p3 }
  0x36   : > { %p1427_p1 = por %p1426_p11, %p1425_p12 }
  0x37   : > { %p1423_p10 = pneg %p1422_p9 }
  0x39   : > { %p1428_p8 = pnand %p1427_p1, %p1423_p10 }
  0x3b   : > { %1431 = shalt.err (!%p1428_p8)
}
  0x3c   : > { %s1432_s26 = scalar_lea.vmem %s269_s17, 64  ;;  %s1493_s10 = smov [#allocation3]  }
  0x3d   : > { %p1433_p13 = scmp.ne.s32.totalorder %s269_s17, %s1432_s26  ;;  %s1437_s12 = sshll.u32 %s1493_s10, 4  ;;  %s1438_s12 = int_to_ptr.vmem [resolvable:$false] %s1437_s12 }
  0x3e   : > { %s1439_s14 = scalar_lea.vmem %s1438_s12, 128  ;;  %p1440_p3 = scmp.lt.s32.totalorder %s269_s17, %s1438_s12 }
  0x3f   : > { %p1435_p0 = pnand %p1433_p13, %p1421_p6  ;;  %p1441_p9 = scmp.lt.s32.totalorder %s1439_s14, %s1432_s26 }
  0x41   : > { %p1436_p2 = pneg %p1435_p0  ;;  %p1442_p4 = por %p1441_p9, %p1440_p3 }
  0x43   : > { %p1443_p5 = pnand %p1442_p4, %p1436_p2 }
  0x45   : > { %1446 = shalt.err (!%p1443_p5)
}
  0x46   : > { %1210 = dma.hbm_to_vmem [thread:$0]  (!%p1619_p7), %s1617_s16, 64, %s269_s17, %s258_s19  }
  0x47   : > { %p1700_p10 = scmp.ne.s32.totalorder %s1697_s8, 0 }
  0x48   : > { %s279_s11 = sand.u32 (!%p1700_p10), 1, %s1477_s27   ;;  %p1701_p6 = scmp.ne.s32.totalorder (!%p1700_p10), %s1696_s30, 0 }
  0x49   : > { %277 = sbr.rel (%p1700_p10) target bundleno = 674 (0x2a2), region = 48  ;;  %s1108_s15 = sshll.u32 (!%p1700_p10), %s279_s11, 2 }
  0x4a   : > { %s280_s13 = scalar_lea.sflag (!%p1700_p10), [#allocation4], %s279_s11  ;;  %s283_s20 = scalar_lea.vmem (!%p1700_p10), [#allocation3], %s1108_s15 }
  0x4e   : > { %1464 = dma.done.wait (%p1701_p6), %s280_s13, 64  }
  0x4f   : > { %1466 = vsyncadd (%p1701_p6), %s280_s13, 4294967232  ;;  %p1702_p4 = scmp.eq.s32.totalorder %s1557_s6, 0 }
  0x51   : > { %1468 = dma.done.wait (%p1702_p4), [#allocation6], 9216   ;;  %p1703_p5 = pmov %p1702_p4 }
  0x52   : > { %v1494_v1 = vmov 0   ;;  %v1255_v2 = vld [vmem:[#allocation5 + $0x24] ss:$16 sps:$4 sm:$0xff]   ;;  %v1257_v3 = vld [vmem:[#allocation5 + $0x2c] ss:$16 sps:$4 sm:$0xff]   ;;  %vm397_vm0 = vcmask 261120  }
  0x53   : > { %1470 = vsyncadd (%p1703_p5), [#allocation6], 4294958080  ;;  %433 = vmatprep.mubr.bf16.mxu0 %v1494_v1  ;;  %474 = vmatprep.mubr.bf16.mxu1 %v1494_v1  ;;  %v1259_v4 = vld [vmem:[#allocation5 + $0x20] ss:$16 sps:$4 sm:$0xff]   ;;  %v1260_v5 = vld [vmem:[#allocation5 + $0x28] ss:$16 sps:$4 sm:$0xff]  }
  0x54   : > { %413 = vmatprep.subr.bf16.mxu0 %v1255_v2  ;;  %454 = vmatprep.subr.bf16.mxu1 %v1257_v3  ;;  %v1261_v6 = vld [vmem:[#allocation5 + $0x4] ss:$16 sps:$4 sm:$0xff]   ;;  %v1263_v7 = vld [vmem:[#allocation5 + $0xc] ss:$16 sps:$4 sm:$0xff]   ;;  %v1265_v8 = vld [vmem:[#allocation5] ss:$16 sps:$4 sm:$0xff]  }
  0x55   : > { %414 = vmatpush1.bf16.msra.mxu0 %v1259_v4  ;;  %455 = vmatpush1.bf16.msra.mxu1 %v1260_v5  ;;  %v1266_v9 = vld [vmem:[#allocation5 + $0x8] ss:$16 sps:$4 sm:$0xff]   ;;  %v1269_v12 = vld [vmem:[#allocation7 + $0x74] ss:$8 sps:$4 sm:$0xff]   ;;  %v1275_v15 = vld [vmem:[#allocation7 + $0x64] ss:$8 sps:$4 sm:$0xff]  }
  0x56   : > { %415 = vmatprep.subr.bf16.mxu0 %v1261_v6  ;;  %456 = vmatprep.subr.bf16.mxu1 %v1263_v7  ;;  %v326_v10 = vld [vmem:[%s283_s20] sm:$0xf]  ;;  %v1278_v16 = vld [vmem:[#allocation7 + $0x164] ss:$8 sps:$4 sm:$0xff]   ;;  %v1273_v17 = vld [vmem:[#allocation7 + $0x60] ss:$8 sps:$4 sm:$0xff]  }
  0x57   : > { %v1267_v11 = vld [vmem:[#allocation7 + $0x70] ss:$8 sps:$4 sm:$0xff]   ;;  %v1272_v14 = vld [vmem:[#allocation7 + $0x174] ss:$8 sps:$4 sm:$0xff]   ;;  %v1276_v18 = vld [vmem:[#allocation7 + $0x160] ss:$8 sps:$4 sm:$0xff]  }
  0x58   : > { %v1270_v13 = vld [vmem:[#allocation7 + $0x170] ss:$8 sps:$4 sm:$0xff]   ;;  %v1281_v19 = vld [vmem:[#allocation7 + $0x54] ss:$8 sps:$4 sm:$0xff]   ;;  %v1287_v23 = vld [vmem:[#allocation7 + $0x44] ss:$8 sps:$4 sm:$0xff]  }
  0x59   : > { %416 = vmatpush1.bf16.msra.mxu0 %v1265_v8  ;;  %457 = vmatpush1.bf16.msra.mxu1 %v1266_v9  ;;  %v1284_v20 = vld [vmem:[#allocation7 + $0x154] ss:$8 sps:$4 sm:$0xff]   ;;  %v1279_v21 = vld [vmem:[#allocation7 + $0x50] ss:$8 sps:$4 sm:$0xff]   ;;  %v1290_v24 = vld [vmem:[#allocation7 + $0x144] ss:$8 sps:$4 sm:$0xff]  }
  0x5a   : > { %895 = vmatprep.subr.bf16.mxu0 %v1269_v12  ;;  %936 = vmatprep.subr.bf16.mxu1 %v1272_v14  ;;  %v1282_v22 = vld [vmem:[#allocation7 + $0x150] ss:$8 sps:$4 sm:$0xff]   ;;  %v1285_v25 = vld [vmem:[#allocation7 + $0x40] ss:$8 sps:$4 sm:$0xff]   ;;  %v1293_v27 = vld [vmem:[#allocation7 + $0x34] ss:$8 sps:$4 sm:$0xff]  }
  0x5b   : > { %v1288_v26 = vld [vmem:[#allocation7 + $0x140] ss:$8 sps:$4 sm:$0xff]   ;;  %v1296_v28 = vld [vmem:[#allocation7 + $0x134] ss:$8 sps:$4 sm:$0xff]   ;;  %v1291_v29 = vld [vmem:[#allocation7 + $0x30] ss:$8 sps:$4 sm:$0xff]  }
  0x5c   : > { %1120 = vmatmul.mubr.msk.bf16.vlgmr.msra.gmra.mxu0 %vm397_vm0, %v326_v10  ;;  %1121 = vmatmul.mubr.msk.bf16.vlgmr.msra.gmra.mxu1 %vm397_vm0, %v326_v10  ;;  %v1294_v30 = vld [vmem:[#allocation7 + $0x130] ss:$8 sps:$4 sm:$0xff]   ;;  %v1299_v31 = vld [vmem:[#allocation7 + $0x24] ss:$8 sps:$4 sm:$0xff]   ;;  %v1297_v33 = vld [vmem:[#allocation7 + $0x20] ss:$8 sps:$4 sm:$0xff]  }
  0x5d   : > { %896 = vmatpush1.bf16.msra.mxu0 %v1267_v11  ;;  %937 = vmatpush1.bf16.msra.mxu1 %v1270_v13  ;;  %v1302_v32 = vld [vmem:[#allocation7 + $0x124] ss:$8 sps:$4 sm:$0xff]   ;;  %v1300_v34 = vld [vmem:[#allocation7 + $0x120] ss:$8 sps:$4 sm:$0xff]   ;;  %v1305_v35 = vld [vmem:[#allocation7 + $0x14] ss:$8 sps:$4 sm:$0xff]   ;;  %v337_v11 = vlaneseq }
  0x5e   : > { %897 = vmatprep.subr.bf16.mxu0 %v1275_v15  ;;  %938 = vmatprep.subr.bf16.mxu1 %v1278_v16  ;;  %v1308_v36 = vld [vmem:[#allocation7 + $0x114] ss:$8 sps:$4 sm:$0xff]   ;;  %v1303_v37 = vld [vmem:[#allocation7 + $0x10] ss:$8 sps:$4 sm:$0xff]   ;;  %v1311_v39 = vld [vmem:[#allocation7 + $0x4] ss:$8 sps:$4 sm:$0xff]  }
  0x5f   : > { %v1306_v38 = vld [vmem:[#allocation7 + $0x110] ss:$8 sps:$4 sm:$0xff]   ;;  %v1314_v40 = vld [vmem:[#allocation7 + $0x104] ss:$8 sps:$4 sm:$0xff]   ;;  %v1309_v41 = vld [vmem:[#allocation7] ss:$8 sps:$4 sm:$0xff]  }
  0x60   : > { %v1312_v42 = vld [vmem:[#allocation7 + $0x100] ss:$8 sps:$4 sm:$0xff]   ;;  %v1317_v43 = vld [vmem:[#allocation7 + $0xf4] ss:$8 sps:$4 sm:$0xff]   ;;  %v1315_v45 = vld [vmem:[#allocation7 + $0xf0] ss:$8 sps:$4 sm:$0xff]  }
  0x61   : > { %898 = vmatpush1.bf16.msra.mxu0 %v1273_v17  ;;  %939 = vmatpush1.bf16.msra.mxu1 %v1276_v18  ;;  %v1320_v44 = vld [vmem:[#allocation7 + $0x1f4] ss:$8 sps:$4 sm:$0xff]   ;;  %v1318_v46 = vld [vmem:[#allocation7 + $0x1f0] ss:$8 sps:$4 sm:$0xff]   ;;  %v1323_v47 = vld [vmem:[#allocation7 + $0xe4] ss:$8 sps:$4 sm:$0xff]  }
  0x62   : > { %899 = vmatprep.subr.bf16.mxu0 %v1281_v19  ;;  %940 = vmatprep.subr.bf16.mxu1 %v1284_v20  ;;  %v1326_v48 = vld [vmem:[#allocation7 + $0x1e4] ss:$8 sps:$4 sm:$0xff]   ;;  %v1321_v49 = vld [vmem:[#allocation7 + $0xe0] ss:$8 sps:$4 sm:$0xff]   ;;  %v1329_v51 = vld [vmem:[#allocation7 + $0xd4] ss:$8 sps:$4 sm:$0xff]  }
  0x63   : > { %v1324_v50 = vld [vmem:[#allocation7 + $0x1e0] ss:$8 sps:$4 sm:$0xff]   ;;  %v1332_v52 = vld [vmem:[#allocation7 + $0x1d4] ss:$8 sps:$4 sm:$0xff]   ;;  %v1327_v53 = vld [vmem:[#allocation7 + $0xd0] ss:$8 sps:$4 sm:$0xff]  }
  0x64   : > { %v1330_v54 = vld [vmem:[#allocation7 + $0x1d0] ss:$8 sps:$4 sm:$0xff]   ;;  %v1335_v55 = vld [vmem:[#allocation7 + $0xc4] ss:$8 sps:$4 sm:$0xff]   ;;  %v1333_v57 = vld [vmem:[#allocation7 + $0xc0] ss:$8 sps:$4 sm:$0xff]  }
  0x65   : > { %900 = vmatpush1.bf16.msra.mxu0 %v1279_v21  ;;  %941 = vmatpush1.bf16.msra.mxu1 %v1282_v22  ;;  %v1338_v56 = vld [vmem:[#allocation7 + $0x1c4] ss:$8 sps:$4 sm:$0xff]   ;;  %v1336_v58 = vld [vmem:[#allocation7 + $0x1c0] ss:$8 sps:$4 sm:$0xff]   ;;  %v1341_v59 = vld [vmem:[#allocation7 + $0xb4] ss:$8 sps:$4 sm:$0xff]  }
  0x66   : > { %901 = vmatprep.subr.bf16.mxu0 %v1287_v23  ;;  %942 = vmatprep.subr.bf16.mxu1 %v1290_v24  ;;  %v1344_v60 = vld [vmem:[#allocation7 + $0x1b4] ss:$8 sps:$4 sm:$0xff]   ;;  %v1339_v61 = vld [vmem:[#allocation7 + $0xb0] ss:$8 sps:$4 sm:$0xff]   ;;  %v1347_v63 = vld [vmem:[#allocation7 + $0xa4] ss:$8 sps:$4 sm:$0xff]  }
  0x67   : > { %v1342_v62 = vld [vmem:[#allocation7 + $0x1b0] ss:$8 sps:$4 sm:$0xff]   ;;  %v1350_v0 = vld [vmem:[#allocation7 + $0x1a4] ss:$8 sps:$4 sm:$0xff]   ;;  %v1345_v1 = vld [vmem:[#allocation7 + $0xa0] ss:$8 sps:$4 sm:$0xff]  }
  0x68   : > { %v1348_v2 = vld [vmem:[#allocation7 + $0x1a0] ss:$8 sps:$4 sm:$0xff]   ;;  %v1353_v3 = vld [vmem:[#allocation7 + $0x94] ss:$8 sps:$4 sm:$0xff]   ;;  %v1351_v5 = vld [vmem:[#allocation7 + $0x90] ss:$8 sps:$4 sm:$0xff]  }
  0x69   : > { %902 = vmatpush1.bf16.msra.mxu0 %v1285_v25  ;;  %943 = vmatpush1.bf16.msra.mxu1 %v1288_v26  ;;  %v1356_v4 = vld [vmem:[#allocation7 + $0x194] ss:$8 sps:$4 sm:$0xff]   ;;  %v1354_v6 = vld [vmem:[#allocation7 + $0x190] ss:$8 sps:$4 sm:$0xff]   ;;  %v1357_v7 = vld [vmem:[#allocation7 + $0x80] ss:$8 sps:$4 sm:$0xff]  }
  0x6a   : > { %903 = vmatprep.subr.bf16.mxu0 %v1293_v27  ;;  %944 = vmatprep.subr.bf16.mxu1 %v1296_v28  ;;  %v1359_v8 = vld [vmem:[#allocation7 + $0x84] ss:$8 sps:$4 sm:$0xff]   ;;  %v1360_v9 = vld [vmem:[#allocation7 + $0x180] ss:$8 sps:$4 sm:$0xff]   ;;  %v338_v12 = vshrl.u32 %v337_v11, 7  ;;  %p321_p7 = scmp.lt.s32.totalorder %s1557_s6, 1 }
  0x6b   : > { %v1362_v10 = vld [vmem:[#allocation7 + $0x184] ss:$8 sps:$4 sm:$0xff]   ;;  %v335_v15 = vld [vmem:[%s1687_s2] sm:$0xf]  ;;  %vm1014_vm7 = vcmask 7168  }
  0x6c   : > { %v1648_v13 = vsub.s32 0, %v338_v12  ;;  %v347_v14 = vsub.s32 2, %v338_v12  ;;  %v1653_v16 = vsub.s32 1, %v338_v12  ;;  %v351_v17 = vsub.s32 3, %v338_v12  ;;  %s1709_s6 = smov (!%p321_p7, %s1557_s6), 1 }
  0x6d   : > { %904 = vmatpush1.bf16.msra.mxu0 %v1291_v29  ;;  %945 = vmatpush1.bf16.msra.mxu1 %v1294_v30  ;;  %s1111_s29 = sshll.u32 %s1709_s6, 3 }
  0x6e   : > { %905 = vmatprep.subr.bf16.mxu0 %v1299_v31  ;;  %946 = vmatprep.subr.bf16.mxu1 %v1302_v32  ;;  %v340_v18 = vrot.slane %v335_v15, %v1648_v13  ;;  %v348_v19 = vrot.slane %v335_v15, %v347_v14  ;;  %v344_v22 = vrot.slane %v335_v15, %v1653_v16  ;;  %s324_s23 = scalar_lea.vmem %s1692_s7, %s1111_s29 }
  0x6f   : > { %v352_v23 = vrot.slane %v335_v15, %v351_v17 }
  0x71   : > { %906 = vmatpush1.bf16.msra.mxu0 %v1297_v33  ;;  %947 = vmatpush1.bf16.msra.mxu1 %v1300_v34 }
  0x72   : > { %907 = vmatprep.subr.bf16.mxu0 %v1305_v35  ;;  %948 = vmatprep.subr.bf16.mxu1 %v1308_v36 }
  0x75   : > { %908 = vmatpush1.bf16.msra.mxu0 %v1303_v37  ;;  %949 = vmatpush1.bf16.msra.mxu1 %v1306_v38 }
  0x76   : > { %909 = vmatprep.subr.bf16.mxu0 %v1311_v39  ;;  %950 = vmatprep.subr.bf16.mxu1 %v1314_v40 }
  0x79   : > { %910 = vmatpush1.bf16.msra.mxu0 %v1309_v41  ;;  %951 = vmatpush1.bf16.msra.mxu1 %v1312_v42 }
  0x7a   : > { %911 = vmatprep.subr.bf16.mxu0 %v1317_v43  ;;  %952 = vmatprep.subr.bf16.mxu1 %v1320_v44 }
  0x7d   : > { %912 = vmatpush2.bf16.msra.mxu0 %v1315_v45  ;;  %953 = vmatpush2.bf16.msra.mxu1 %v1318_v46  ;;  %v563_v46 = vld [vmem:[%s1689_s4] sm:$0x3] }
  0x7e   : > { %913 = vmatprep.subr.bf16.mxu0 %v1323_v47  ;;  %954 = vmatprep.subr.bf16.mxu1 %v1326_v48  ;;  %v568_v47 = vrot.slane %v563_v46, %v1648_v13  ;;  %v572_v48 = vrot.slane %v563_v46, %v1653_v16 }
  0x81   : > { %914 = vmatpush2.bf16.msra.mxu0 %v1321_v49  ;;  %955 = vmatpush2.bf16.msra.mxu1 %v1324_v50 }
  0x82   : > { %915 = vmatprep.subr.bf16.mxu0 %v1329_v51  ;;  %956 = vmatprep.subr.bf16.mxu1 %v1332_v52 }
  0x85   : > { %916 = vmatpush2.bf16.msra.mxu0 %v1327_v53  ;;  %957 = vmatpush2.bf16.msra.mxu1 %v1330_v54 }
  0x86   : > { %917 = vmatprep.subr.bf16.mxu0 %v1335_v55  ;;  %958 = vmatprep.subr.bf16.mxu1 %v1338_v56  ;;  %v983_v56 = vld [vmem:[%s1690_s5] sm:$0x3] }
  0x89   : > { %918 = vmatpush2.bf16.msra.mxu0 %v1333_v57  ;;  %959 = vmatpush2.bf16.msra.mxu1 %v1336_v58 }
  0x8a   : > { %919 = vmatprep.subr.bf16.mxu0 %v1341_v59  ;;  %960 = vmatprep.subr.bf16.mxu1 %v1344_v60 }
  0x8d   : > { %920 = vmatpush2.bf16.msra.mxu0 %v1339_v61  ;;  %961 = vmatpush2.bf16.msra.mxu1 %v1342_v62  ;;  %v988_v62 = vrot.slane %v983_v56, %v1648_v13 }
  0x8e   : > { %921 = vmatprep.subr.bf16.mxu0 %v1347_v63  ;;  %962 = vmatprep.subr.bf16.mxu1 %v1350_v0  ;;  %v992_v63 = vrot.slane %v983_v56, %v1653_v16 }
  0x91   : > { %922 = vmatpush2.bf16.msra.mxu0 %v1345_v1  ;;  %963 = vmatpush2.bf16.msra.mxu1 %v1348_v2 }
  0x92   : > { %923 = vmatprep.subr.bf16.mxu0 %v1353_v3  ;;  %964 = vmatprep.subr.bf16.mxu1 %v1356_v4 }
  0x95   : > { %924 = vmatpush2.bf16.msra.mxu0 %v1351_v5  ;;  %965 = vmatpush2.bf16.msra.mxu1 %v1354_v6 }
  0x96   : > { %925 = vmatprep.subr.bf16.mxu0 %v1359_v8  ;;  %966 = vmatprep.subr.bf16.mxu1 %v1362_v10 }
  0x99   : > { %926 = vmatpush2.bf16.msra.mxu0 %v1357_v7  ;;  %967 = vmatpush2.bf16.msra.mxu1 %v1360_v9  ;;  %v1186_v7 = vld [vmem:[#allocation2] ss:$0 sm:$0xff] }
 0x11c   : > { %v435_v20 = vpop.f32.mrf.mxu0  ;;  %v476_v21 = vpop.f32.mrf.mxu1 }
 0x11d   : > { %v436_v24 = vadd.f32 %v435_v20, %v340_v18  ;;  %v477_v25 = vadd.f32 %v476_v21, %v348_v19 }
 0x11e   : > { %v437_v26 = vpop.f32.mrf.mxu0  ;;  %v478_v27 = vpop.f32.mrf.mxu1 }
 0x11f   : > { %v487_v28 = vmul.f32 0.2, %v436_v24  ;;  %vm483_vm1 = vcmp.gt.f32.partialorder %v436_v24, 0.0  ;;  %v489_v29 = vmul.f32 0.2, %v477_v25  ;;  %v438_v30 = vadd.f32 %v437_v26, %v344_v22 }
 0x120   : > { %v479_v31 = vadd.f32 %v478_v27, %v352_v23  ;;  %v439_v32 = vpop.f32.mrf.mxu0  ;;  %v480_v33 = vpop.f32.mrf.mxu1  ;;  %vm485_vm2 = vcmp.gt.f32.partialorder %v477_v25, 0.0 }
 0x121   : > { %vm484_vm3 = vcmp.gt.f32.partialorder %v438_v30, 0.0  ;;  %v488_v34 = vmul.f32 0.2, %v438_v30  ;;  %v491_v37 = vsel %vm483_vm1, %v436_v24, %v487_v28  ;;  %v493_v39 = vsel %vm485_vm2, %v477_v25, %v489_v29 }
 0x122   : > { %v440_v35 = vpop.f32.mrf.mxu0  ;;  %v481_v36 = vpop.f32.mrf.mxu1  ;;  %vm486_vm4 = vcmp.gt.f32.partialorder %v479_v31, 0.0  ;;  %v490_v38 = vmul.f32 0.2, %v479_v31  ;;  %v495_v43 = vpack.c.bf16 %v491_v37, %v491_v37  ;;  %v497_v45 = vpack.c.bf16 %v493_v39, %v493_v39 }
 0x123   : > { %v492_v40 = vsel %vm484_vm3, %v438_v30, %v488_v34 }
 0x124   : > { %v496_v41 = vpack.c.bf16 %v492_v40, %v492_v40  ;;  %v494_v42 = vsel %vm486_vm4, %v479_v31, %v490_v38 }
 0x125   : > { %v498_v44 = vpack.c.bf16 %v494_v42, %v494_v42 }
 0x126   : > { %927 = vmatprep.mubr.bf16.mxu0 %v496_v41 }
 0x127   : > { %968 = vmatprep.mubr.bf16.mxu1 %v498_v44  ;;  %928 = vmatmul.mubr.bf16.vlgmr.msra.gmra.mxu0 %v495_v43 }
 0x128   : > { %969 = vmatmul.mubr.bf16.vlgmr.msra.gmra.mxu1 %v497_v45 }
 0x1e7   : > { %v929_v49 = vpop.f32.mrf.mxu0 }
 0x1e8   : > { %v930_v50 = vadd.f32 %v929_v49, %v568_v47  ;;  %v970_v51 = vpop.f32.mrf.mxu1 }
 0x1e9   : > { %v931_v52 = vpop.f32.mrf.mxu0 }
 0x1ea   : > { %v971_v53 = vadd.f32 %v970_v51, %v930_v50  ;;  %v932_v54 = vadd.f32 %v931_v52, %v572_v48  ;;  %v972_v55 = vpop.f32.mrf.mxu1 }
 0x1eb   : > { %v933_v57 = vpop.f32.mrf.mxu0 }
 0x1ec   : > { %vm977_vm5 = vcmp.gt.f32.partialorder %v971_v53, 0.0  ;;  %v979_v58 = vmul.f32 0.2, %v971_v53  ;;  %v973_v59 = vadd.f32 %v972_v55, %v932_v54  ;;  %v974_v60 = vpop.f32.mrf.mxu1 }
 0x1ed   : > { %v934_v61 = vpop.f32.mrf.mxu0 }
 0x1ee   : > { %vm978_vm6 = vcmp.gt.f32.partialorder %v973_v59, 0.0  ;;  %v980_v0 = vmul.f32 0.2, %v973_v59  ;;  %v975_v1 = vpop.f32.mrf.mxu1  ;;  %v981_v2 = vsel %vm977_vm5, %v971_v53, %v979_v58 }
 0x1ef   : > { %v995_v4 = vmul.f32 %v988_v62, %v981_v2 }
 0x1f0   : > { %v982_v3 = vsel %vm978_vm6, %v973_v59, %v980_v0 }
 0x1f1   : > { %v996_v5 = vmul.f32 %v992_v63, %v982_v3 }
 0x1f3   : > { %v997_v6 = vadd.f32 %v996_v5, %v995_v4 }
 0x1f5   : > { %998 = vadd.xlane.f32.xlu0 %v997_v6 }
 0x27e   : > { %v999_v8 = vpop.xlane.xlu0 %998 }
 0x27f   : > { %v1007_v9 = vadd.f32 %v1186_v7, %v999_v8 }
 0x281   : > { %v1187_v10 = vmul.f32 -1.442695, %v1007_v9 }
 0x283   : > { %1363 = vpow2.f32 %v1187_v10 }
 0x290   : > { %v1364_v11 = vpop.eup %1363 }
 0x291   : > { %v1011_v12 = vadd.f32 1.0, %v1364_v11 }
 0x293   : > { %1365 = vrcp.f32 %v1011_v12 }
 0x2a0   : > { %v1366_v13 = vpop.eup %1365 }
 0x2a1   : > { %1015 = vst.msk [vmem:[%s324_s23] sm:$0xff] %vm1014_vm7, %v1366_v13 }
 0x2a2 PF: > { %p20_p12 = scmp.ge.s32.totalorder %s1600_s24, 4   ;;  %s1704_s26 = smov %s1477_s27 }
 0x2a3   : > { %s1705_s27 = smov %s1481_s28  ;;  %s1706_s28 = smov %s1609_s9 }
 0x2a4   : > { %s1707_s29 = smov %s1600_s24  ;;  %22 = sbr.rel (!%p20_p12) target bundleno = 7 (0x7), region = 96 }
 0x2a9   :  { %1035 = vsyncpa [#allocation4], 1 }
 0x2aa   :  { %1037 = vsyncpa [#allocation4 + $0x1], 1 }
 0x2ab   :  { %1038 = vsyncpa [#allocation6], 1 }

</bundles_post_ra>
